<compile_context>
chip_gen: v7x
topology: tpu7x:2x2x1
jax: 0.10.0
libtpu: 0.0.40
codegen_flags: <defaults>
</compile_context>

<pallas_src>
import functools

import jax
import jax.numpy as jnp
from jax.experimental import pallas as pl
from jax.experimental.pallas import tpu as pltpu


# ---------------------------------------------------------------------------
# Parameter slab layout (single (16, 48) f32 array, one DMA, VMEM-resident):
#   slab[0:10,  0:10] = W1  (out, in)        h1 = relu(W1 @ x  + b1)
#   slab[0:10, 10:20] = W2                   h2 = relu(W2 @ h1 + b2)
#   slab[0:1,  20:30] = W3  (1, 10)          y  =       W3 @ h2 + b3
#   slab[0:10, 30:31] = b1  (column)
#   slab[0:10, 31:32] = b2  (column)
#   slab[0:1,  32:33] = b3
# ---------------------------------------------------------------------------
_SLAB_SHAPE = (16, 48)


def _simplenet_kernel(x_ref, slab_ref, o_ref):
    """Fused 3-layer MLP in batch-on-lanes layout.

    x_ref:    (10, TB)  feature-major activations (batch on the lane axis)
    slab_ref: (16, 48)  packed parameters (resident across grid steps)
    o_ref:    (1, TB)   lane-dense output
    """
    s = slab_ref[...]                       # tiny: 3 KiB, 2 vreg columns
    w1 = s[0:10, 0:10]
    w2 = s[0:10, 10:20]
    w3 = s[0:1, 20:30]
    b1 = s[0:10, 30:31]
    b2 = s[0:10, 31:32]
    b3 = s[0:1, 32:33]

    x = x_ref[...]                          # (10, TB)

    h1 = jnp.dot(w1, x, preferred_element_type=jnp.float32) + b1
    h1 = jnp.maximum(h1, 0.0)               # (10, TB)

    h2 = jnp.dot(w2, h1, preferred_element_type=jnp.float32) + b2
    h2 = jnp.maximum(h2, 0.0)               # (10, TB)

    # Layer 3 stays MXU-friendly: (1,10) @ (10,TB) -> N = TB output lanes.
    o_ref[...] = jnp.dot(w3, h2, preferred_element_type=jnp.float32) + b3


def _round_up(n, m):
    return ((n + m - 1) // m) * m


def _forward_xla(x, slab):
    """Plain-XLA fallback for tiny batches (kernel overhead > work)."""
    w1 = slab[0:10, 0:10]
    w2 = slab[0:10, 10:20]
    w3 = slab[0:1, 20:30]
    b1 = slab[0:10, 30]
    b2 = slab[0:10, 31]
    b3 = slab[0, 32]
    h1 = jnp.maximum(x @ w1.T + b1, 0.0)
    h2 = jnp.maximum(h1 @ w2.T + b2, 0.0)
    return h2 @ w3.T + b3


def simplenet_forward(x, slab, *, tb=512, use_pallas=None):
    """x: (B, 10) float32. slab: packed (16, 48) parameter slab. Returns (B, 1)."""
    B = x.shape[0]

    # Dispatch policy: a Pallas launch + DMAs is not worth it for tiny batches.
    if use_pallas is None:
        use_pallas = B >= 256
    if not use_pallas:
        return _forward_xla(x, slab)

    # Wrapper-side layout plumbing: feature-major so batch rides the lanes.
    xt = x.T                                              # (10, B)
    tb = min(tb, _round_up(B, 128))                       # lane-aligned tile
    b_pad = _round_up(B, tb)
    if b_pad != B:
        xt = jnp.pad(xt, ((0, 0), (0, b_pad - B)))        # (10, b_pad)

    grid = (pl.cdiv(b_pad, tb),)

    y = pl.pallas_call(
        _simplenet_kernel,
        out_shape=jax.ShapeDtypeStruct((1, b_pad), jnp.float32),
        grid=grid,
        in_specs=[
            # activations: pipelined over the batch grid
            pl.BlockSpec((10, tb), lambda i: (0, i)),
            # parameter slab: constant block index -> fetched once, stays in VMEM
            pl.BlockSpec(_SLAB_SHAPE, lambda i: (0, 0)),
        ],
        out_specs=pl.BlockSpec((1, tb), lambda i: (0, i)),
        compiler_params=pltpu.CompilerParams(
            dimension_semantics=("parallel",),            # shard across TCs on v7x
            vmem_limit_bytes=32 * 1024 * 1024,            # explicit; safe on v5e/v6e/v7x
        ),
    )(xt, slab)

    return y[:, :B].T                                     # back to PyTorch (B, 1)


def init_params(key):
    """Deterministic init matching nn.Linear (W stored as (out_features, in_features))."""
    ks = jax.random.split(key, 6)

    def linear(kw, kb, fan_in, fan_out):
        bound = 1.0 / jnp.sqrt(fan_in)
        w = jax.random.uniform(kw, (fan_out, fan_in), jnp.float32, -bound, bound)
        b = jax.random.uniform(kb, (fan_out,), jnp.float32, -bound, bound)
        return w, b

    w1, b1 = linear(ks[0], ks[1], 10, 10)
    w2, b2 = linear(ks[2], ks[3], 10, 10)
    w3, b3 = linear(ks[4], ks[5], 10, 1)
    return {"w1": w1, "b1": b1, "w2": w2, "b2": b2, "w3": w3, "b3": b3}


def pack_params(p):
    """Consolidate all weights/biases into one (16, 48) f32 slab (single DMA)."""
    slab = jnp.zeros(_SLAB_SHAPE, jnp.float32)
    slab = slab.at[0:10, 0:10].set(p["w1"])
    slab = slab.at[0:10, 10:20].set(p["w2"])
    slab = slab.at[0:1, 20:30].set(p["w3"])
    slab = slab.at[0:10, 30].set(p["b1"])
    slab = slab.at[0:10, 31].set(p["b2"])
    slab = slab.at[0, 32].set(p["b3"][0])
    return slab


def _reference(x, p):
    """Pure-JAX reference with PyTorch semantics (y = x @ W.T + b)."""
    h1 = jnp.maximum(x @ p["w1"].T + p["b1"], 0.0)
    h2 = jnp.maximum(h1 @ p["w2"].T + p["b2"], 0.0)
    return h2 @ p["w3"].T + p["b3"]


if __name__ == "__main__":
    key = jax.random.PRNGKey(0)
    k_x, k_x2, k_p = jax.random.split(key, 3)

    params = init_params(k_p)
    slab = pack_params(params)

    # Small batch (spec-consistent test case) — force the Pallas path to exercise it.
    B = 8
    x = jax.random.normal(k_x, (B, 10), dtype=jnp.float32)
    y = jax.block_until_ready(simplenet_forward(x, slab, use_pallas=True))
    y_ref = _reference(x, params)
    assert y.shape == (B, 1)
    assert jnp.allclose(y, y_ref, atol=1e-5, rtol=1e-5)

    # Larger, non-multiple-of-tile batch: exercises grid > 1, padding, pipelining.
    B2 = 1000
    x2 = jax.random.normal(k_x2, (B2, 10), dtype=jnp.float32)
    y2 = jax.block_until_ready(simplenet_forward(x2, slab, use_pallas=True))
    y2_ref = _reference(x2, params)
    assert y2.shape == (B2, 1)
    assert jnp.allclose(y2, y2_ref, atol=1e-5, rtol=1e-5)

    # TODO(synk): optional bf16 streaming of x (f32 accumulation) for v6e/v7x
    # bandwidth wins was left out to keep exact f32 parity with the reference.

    print("KERNEL_OK")
</pallas_src>

<mosaic_0001>
module attributes {stable_mosaic.version = 11 : i64} {
  func.func @_simplenet_kernel(%arg0: i32, %arg1: memref<10x128xf32, #tpu.memory_space<vmem>>, %arg2: memref<16x48xf32, #tpu.memory_space<vmem>>, %arg3: memref<1x128xf32, #tpu.memory_space<vmem>>) attributes {dimension_semantics = [#tpu.dimension_semantics<parallel>], iteration_bounds = array<i64: 1>, scalar_prefetch = 0 : i64, scratch_operands = 0 : i64, tpu.core_type = #tpu.core_type<tc>, window_params = [{transform_indices = @transform_0, window_bounds = array<i64: 10, 128>}, {pipeline_mode = #tpu.pipeline_mode<synchronous>, transform_indices = @transform_1, window_bounds = array<i64: 16, 48>}, {transform_indices = @transform_2, window_bounds = array<i64: 1, 128>}]} {
    %c0 = arith.constant 0 : index
    %c0_0 = arith.constant 0 : index
    %0 = vector.load %arg2[%c0, %c0_0] : memref<16x48xf32, #tpu.memory_space<vmem>>, vector<16x48xf32>
    %1 = vector.extract_strided_slice %0 {offsets = [0, 0], sizes = [10, 10], strides = [1, 1]} : vector<16x48xf32> to vector<10x10xf32>
    %2 = vector.extract_strided_slice %0 {offsets = [0, 10], sizes = [10, 10], strides = [1, 1]} : vector<16x48xf32> to vector<10x10xf32>
    %3 = vector.extract_strided_slice %0 {offsets = [0, 20], sizes = [1, 10], strides = [1, 1]} : vector<16x48xf32> to vector<1x10xf32>
    %4 = vector.extract_strided_slice %0 {offsets = [0, 30], sizes = [10, 1], strides = [1, 1]} : vector<16x48xf32> to vector<10x1xf32>
    %5 = vector.extract_strided_slice %0 {offsets = [0, 31], sizes = [10, 1], strides = [1, 1]} : vector<16x48xf32> to vector<10x1xf32>
    %6 = vector.extract_strided_slice %0 {offsets = [0, 32], sizes = [1, 1], strides = [1, 1]} : vector<16x48xf32> to vector<1x1xf32>
    %c0_1 = arith.constant 0 : index
    %c0_2 = arith.constant 0 : index
    %7 = vector.load %arg1[%c0_1, %c0_2] : memref<10x128xf32, #tpu.memory_space<vmem>>, vector<10x128xf32>
    %cst = arith.constant dense<0.000000e+00> : vector<10x128xf32>
    %8 = tpu.matmul %1, %7, %cst {dimension_numbers = #tpu.dot_dimension_numbers<[1], [0], [0], [1], [0, 0, 1, 1], [], []>} : vector<10x10xf32>, vector<10x128xf32>, vector<10x128xf32> -> vector<10x128xf32>
    %9 = vector.broadcast %4 : vector<10x1xf32> to vector<10x128xf32>
    %10 = arith.addf %8, %9 : vector<10x128xf32>
    %cst_3 = arith.constant 0.000000e+00 : f32
    %11 = vector.broadcast %cst_3 : f32 to vector<10x128xf32>
    %12 = arith.maximumf %10, %11 : vector<10x128xf32>
    %cst_4 = arith.constant dense<0.000000e+00> : vector<10x128xf32>
    %13 = tpu.matmul %2, %12, %cst_4 {dimension_numbers = #tpu.dot_dimension_numbers<[1], [0], [0], [1], [0, 0, 1, 1], [], []>} : vector<10x10xf32>, vector<10x128xf32>, vector<10x128xf32> -> vector<10x128xf32>
    %14 = vector.broadcast %5 : vector<10x1xf32> to vector<10x128xf32>
    %15 = arith.addf %13, %14 : vector<10x128xf32>
    %cst_5 = arith.constant 0.000000e+00 : f32
    %16 = vector.broadcast %cst_5 : f32 to vector<10x128xf32>
    %17 = arith.maximumf %15, %16 : vector<10x128xf32>
    %cst_6 = arith.constant dense<0.000000e+00> : vector<1x128xf32>
    %18 = tpu.matmul %3, %17, %cst_6 {dimension_numbers = #tpu.dot_dimension_numbers<[1], [0], [0], [1], [0, 0, 1, 1], [], []>} : vector<1x10xf32>, vector<10x128xf32>, vector<1x128xf32> -> vector<1x128xf32>
    %19 = vector.broadcast %6 : vector<1x1xf32> to vector<1x128xf32>
    %20 = arith.addf %18, %19 : vector<1x128xf32>
    %c0_7 = arith.constant 0 : index
    %c0_8 = arith.constant 0 : index
    %21 = vector.load %arg3[%c0_7, %c0_8] : memref<1x128xf32, #tpu.memory_space<vmem>>, vector<1x128xf32>
    tpu.vector_store %arg3[%c0_7, %c0_8], %20 {strides = array<i32>} : memref<1x128xf32, #tpu.memory_space<vmem>>, vector<1x128xf32>,
    return
  }
  func.func @transform_0(%arg0: i32) -> (i32, i32) {
    %c0_i32 = arith.constant 0 : i32
    %c0_i32_0 = arith.constant 0 : i32
    return %c0_i32, %arg0 : i32, i32
  }
  func.func @transform_1(%arg0: i32) -> (i32, i32) {
    %c0_i32 = arith.constant 0 : i32
    %c0_i32_0 = arith.constant 0 : i32
    %c0_i32_1 = arith.constant 0 : i32
    return %c0_i32, %c0_i32_0 : i32, i32
  }
  func.func @transform_2(%arg0: i32) -> (i32, i32) {
    %c0_i32 = arith.constant 0 : i32
    %c0_i32_0 = arith.constant 0 : i32
    return %c0_i32, %arg0 : i32, i32
  }
}

</mosaic_0001>

<bundles_post_ra>
// kernel: tpu_custom_call.1
= control target key start
LH: loop header
LB: loop body
LE: loop exit
PB: predicated region body
PF: predicated region fallthrough
CT: control target
= control target key end

     0   :  { %7 = vsyncpa [#allocation3], 0  ;;  %s564_s0 = inlined_call_operand.hbm [shape: f32[10,128], index: 0, kind: input, shape index: {}]   ;;  %s565_s1 = inlined_call_operand.hbm [shape: f32[16,48], index: 1, kind: input, shape index: {}]   ;;  %s566_s2 = inlined_call_operand.hbm [shape: f32[1,128], index: 2, kind: output, shape index: {}]  }
   0x1   :  { %8 = vsyncpa [#allocation6], 0 }
   0x2   :  { %9 = vsyncpa [#allocation4], 0  ;;  %s480_s9 = smov [#allocation2]   ;;  %s408_s13 = scalar_lea.hbm %s564_s0, 256 }
   0x3   :  { %s15_s10 = sshll.u32 %s480_s9, 4  ;;  %p409_p0 = scmp.ne.s32.totalorder %s564_s0, %s408_s13  ;;  %s16_s10 = int_to_ptr.vmem [resolvable:$true] %s15_s10 }
   0x4   :  { %p412_p1 = scmp.lt.u32.totalorder %s408_s13, %s564_s0 }
   0x6   :  { %p414_p2 = pnand %p412_p1, %p409_p0 }
   0x8   :  { %417 = shalt.err (!%p414_p2)
}
   0x9   :  { %s418_s18 = scalar_lea.vmem %s16_s10, 256  ;;  %p423_p4 = scmp.lt.s32.totalorder %s16_s10, %s16_s10 }
   0xa   :  { %p419_p3 = scmp.ne.s32.totalorder %s16_s10, %s418_s18  ;;  %p424_p5 = scmp.lt.s32.totalorder %s418_s18, %s418_s18 }
   0xc   :  { %p425_p6 = por %p424_p5, %p423_p4 }
   0xe   :  { %p426_p7 = pnand %p425_p6, %p419_p3 }
  0x10   :  { %429 = shalt.err (!%p426_p7)
}
  0x11   :  { %s481_s19 = smov 128   ;;  %s482_s20 = smov 8  }
  0x12   :  { %21 = dma.hbm_to_vmem [thread:$0]  %s564_s0, 256, %s16_s10, [#allocation3], %s481_s19, %s481_s19, %s482_s20  }
  0x13   :  { %s483_s23 = smov [#allocation5]   ;;  %s430_s27 = scalar_lea.hbm %s565_s1, 256 }
  0x14   :  { %s27_s24 = sshll.u32 %s483_s23, 4  ;;  %p431_p8 = scmp.ne.s32.totalorder %s565_s1, %s430_s27  ;;  %s28_s24 = int_to_ptr.vmem [resolvable:$true] %s27_s24 }
  0x15   :  { %p434_p9 = scmp.lt.u32.totalorder %s430_s27, %s565_s1 }
  0x17   :  { %p436_p10 = pnand %p434_p9, %p431_p8 }
  0x19   :  { %439 = shalt.err (!%p436_p10)
}
  0x1a   :  { %s440_s4 = scalar_lea.vmem %s28_s24, 256  ;;  %p445_p12 = scmp.lt.s32.totalorder %s28_s24, %s28_s24 }
  0x1b   :  { %p441_p11 = scmp.ne.s32.totalorder %s28_s24, %s440_s4  ;;  %p446_p13 = scmp.lt.s32.totalorder %s440_s4, %s440_s4 }
  0x1d   :  { %p447_p0 = por %p446_p13, %p445_p12 }
  0x1f   :  { %p448_p1 = pnand %p447_p0, %p441_p11 }
  0x21   :  { %451 = shalt.err (!%p448_p1)
}
  0x22   :  { %33 = dma.hbm_to_vmem [thread:$0]  %s565_s1, 256, %s28_s24, [#allocation6], %s481_s19, %s481_s19, %s482_s20  }
  0x23   :  { %474 = dma.done.wait [#allocation3], 256  }
  0x24   :  { %475 = vsyncadd [#allocation3], 4294967040 }
  0x25   :  { %476 = dma.done.wait [#allocation6], 256  }
  0x26   :  { %477 = vsyncadd [#allocation6], 4294967040  ;;  %v484_v0 = vmov 30   ;;  %vm59_vm0 = vcmask 1041408   ;;  %vm54_vm1 = vcmask 80896   ;;  %vm485_vm2 = vmmov 1  }
  0x27   :  { %404 = vset.pattern.permute.xlu0 %v484_v0  ;;  %vm533_vm3 = vmpackc.low %vm59_vm0, %vm485_vm2  ;;  %v42_v2 = vld [vmem:[#allocation2] sm:$0xff]  ;;  %v43_v3 = vld [vmem:[#allocation2 + $0x8] sm:$0x3]  ;;  %s486_s1 = smov 118   ;;  %v487_v7 = vmov 31   ;;  %s488_s6 = smov 108  }
  0x28   :  { %v40_v4 = vld [vmem:[#allocation5] sm:$0xff]  ;;  %v374_v5 = vpack.c.bf16 %v43_v3, %v42_v2  ;;  %v41_v6 = vld [vmem:[#allocation5 + $0x8] sm:$0xff]  ;;  %406 = vset.pattern.permute.xlu1 %v487_v7  ;;  %v489_v19 = vmov 0.0|0.0   ;;  %vm490_vm4 = vmmov 0   ;;  %v491_v20 = vmov 0.0   ;;  %s493_s7 = smov [#allocation7]  }
  0x29   :  { %357 = vmatprep.mubr.msk.f32.mxu0 %vm54_vm1, %v40_v4  ;;  %46 = vperm.xlu0 %404, %v40_v4   ;;  %v492_v21 = vmov 32   ;;  %s324_s8 = sshll.u32 %s493_s7, 4  ;;  %s325_s8 = int_to_ptr.vmem [resolvable:$true] %s324_s8 }
  0x2a   :  { %148 = vrot.lane.b32.xlu1 %v40_v4, %s486_s1  ;;  %376 = vmatprep.subr.msk.bf16.mxu0 %vm533_vm3, %v374_v5  ;;  %s452_s9 = scalar_lea.vmem %s325_s8, 16  ;;  %s456_s10 = scalar_lea.vmem %s325_s8, 32 }
  0x2b   :  { %379 = vmatpush3.bf16.msk.msra.mxu0 %vm533_vm3, %v374_v5  ;;  %p453_p2 = scmp.ne.s32.totalorder %s325_s8, %s452_s9  ;;  %p457_p3 = scmp.lt.s32.totalorder %s325_s8, %s325_s8 }
  0x2c   :  { %386 = vmatprep.subr.bf16.mxu0 %v489_v19  ;;  %p458_p4 = scmp.lt.s32.totalorder %s456_s10, %s452_s9 }
  0x2d   :  { %51 = vperm.xlu0 %404, %v41_v6  }
  0x2e   :  { %150 = vrot.lane.b32.xlu1 %v41_v6, %s486_s1  ;;  %358 = vmatmul.mubr.msk.f32.vlgmr.msra.gmra.mrb[0].mxu0 %vm54_vm1, %v41_v6  ;;  %p459_p5 = por %p458_p4, %p457_p3 }
  0x2f   :  { %371 = vmatprep.mubr.msk.f32.mxu0 %vm490_vm4, %v491_v20 }
  0x30   :  { %p460_p6 = pnand %p459_p5, %p453_p2 }
  0x31   :  { %405 = vset.pattern.permute.xlu0 %v487_v7 }
  0x32   :  { %145 = vperm.xlu1 %406, %v41_v6   ;;  %141 = vperm.xlu0 %405, %v40_v4  }
  0x36   :  { %240 = vrot.lane.b32.xlu1 %v40_v4, %s488_s6  ;;  %407 = vset.pattern.permute.xlu0 %v492_v21 }
  0x37   :  { %237 = vperm.xlu0 %407, %v40_v4  }
  0x9c   :  { %v149_v8 = vpop.permute.xlu1 %148 }
  0x9d   :  { %364 = vmatprep.mubr.msk.f32.mxu1 %vm54_vm1, %v149_v8 }
  0xa0   :  { %v151_v18 = vpop.permute.xlu1 %150 }
  0xa8   :  { %v47_v9 = vpop.permute.xlu0 %46 }
  0xac   :  { %v52_v10 = vpop.permute.xlu0 %51 }
  0xb1   :  { %v146_v22 = vpop.permute.xlu1 %145  ;;  %v142_v23 = vpop.permute.xlu0 %141 }
  0xb5   :  { %v241_v31 = vpop.permute.xlu1 %240 }
  0xb6   :  { %v238_v32 = vpop.permute.xlu0 %237 }
 0x101   :  { %v359_v11 = vpop.f32.mrb[0].mxu0 }
 0x102   :  { %v135_v12 = vadd.f32 %v359_v11, %v52_v10  ;;  %v129_v13 = vpop.f32.mrb[1].mxu0 }
 0x103   :  { %v130_v14 = vadd.f32 %v129_v13, %v47_v9 }
 0x104   :  { %v139_v15 = vmax.f32 %v135_v12, 0.0 }
 0x105   :  { %v138_v16 = vmax.f32 %v130_v14, 0.0 }
 0x107   :  { %v380_v17 = vpack.c.bf16 %v139_v15, %v138_v16 }
 0x109   :  { %382 = vmatprep.subr.msk.bf16.mxu1 %vm533_vm3, %v380_v17 }
 0x10a   :  { %385 = vmatpush3.bf16.msk.msra.mxu1 %vm533_vm3, %v380_v17 }
 0x10d   :  { %365 = vmatmul.mubr.msk.f32.vlgmr.msra.gmra.mrb[0].mxu1 %vm54_vm1, %v151_v18 }
 0x1e0   :  { %v366_v24 = vpop.f32.mrb[0].mxu1 }
 0x1e1   :  { %v231_v25 = vadd.f32 %v366_v24, %v146_v22  ;;  %v225_v26 = vpop.f32.mrb[1].mxu1 }
 0x1e2   :  { %v226_v27 = vadd.f32 %v225_v26, %v142_v23 }
 0x1e3   :  { %v235_v28 = vmax.f32 %v231_v25, 0.0 }
 0x1e4   :  { %v234_v29 = vmax.f32 %v226_v27, 0.0 }
 0x1e6   :  { %v387_v30 = vpack.c.bf16 %v235_v28, %v234_v29 }
 0x1e8   :  { %389 = vmatpush3.bf16.msk.msra.mxu0 %vm533_vm3, %v387_v30 }
 0x1eb   :  { %372 = vmatmul.mubr.msk.f32.vlgmr.msra.gmra.mrb[2].mxu0 %vm54_vm1, %v241_v31 }
 0x2be   :  { %v313_v33 = vpop.f32.mrb[2].mxu0 }
 0x2bf   :  { %v314_v34 = vadd.f32 %v313_v33, %v238_v32  ;;  %v373_v35 = vpop.f32.mrb[3].mxu0 }
 0x2c1   :  { %317 = vst [vmem:[#allocation7] sm:$0x1] %v314_v34 }
 0x2c2   :  { %463 = shalt.err (!%p460_p6)
}
 0x2c3   :  { %s464_s13 = scalar_lea.hbm %s566_s2, 16 }
 0x2c4   :  { %p465_p7 = scmp.ne.s32.totalorder %s566_s2, %s464_s13  ;;  %p468_p8 = scmp.lt.u32.totalorder %s464_s13, %s566_s2 }
 0x2c6   :  { %p470_p9 = pnand %p468_p8, %p465_p7 }
 0x2c8   :  { %473 = shalt.err (!%p470_p9)
}
 0x2c9   :  { %327 = dma.vmem_to_hbm [thread:$0]  %s325_s8, 16, %s566_s2, [#allocation4]  }
 0x2ca   :  { %478 = dma.done.wait [#allocation4], 16  }
 0x2cb   :  { %479 = vsyncadd [#allocation4], 4294967280 }
 0x2cc   :  { %331 = vsyncpa [#allocation3], 1 }
 0x2cd   :  { %332 = vsyncpa [#allocation6], 1 }
 0x2ce   :  { %333 = vsyncpa [#allocation4], 1 }

</bundles_post_ra>
